<compile_context>
chip_gen: v5e
topology: v5e:2x2
jax: 0.10.0
libtpu: 0.0.40
codegen_flags: <defaults>
</compile_context>

<pallas_src>
import functools

import jax
import jax.numpy as jnp
from jax.experimental import pallas as pl
from jax.experimental.pallas import tpu as pltpu

_LANES = 128
_MAX_TILE_ROWS = 512  # sublane rows per coordinate per grid step (<= 1 MiB/block)


def _giou_kernel(pred_ref, target_ref, loss_ref, psum_ref, *, eps, n_valid,
                 tile_boxes):
    # pred_ref / target_ref : (4, tile_r, 128) f32 blocks in VMEM
    # loss_ref              : (tile_r, 128)    per-box loss block
    # psum_ref              : (1, 8, 128)      per-tile partial sums block
    px1 = pred_ref[0]
    py1 = pred_ref[1]
    px2 = pred_ref[2]
    py2 = pred_ref[3]

    tx1 = target_ref[0]
    ty1 = target_ref[1]
    tx2 = target_ref[2]
    ty2 = target_ref[3]

    # intersection ('+1' pixel-offset convention, matching the PyTorch code)
    w = jnp.maximum(jnp.minimum(px2, tx2) - jnp.maximum(px1, tx1) + 1.0, 0.0)
    h = jnp.maximum(jnp.minimum(py2, ty2) - jnp.maximum(py1, ty1) + 1.0, 0.0)
    overlap = w * h

    # areas / union
    ap = (px2 - px1 + 1.0) * (py2 - py1 + 1.0)
    ag = (tx2 - tx1 + 1.0) * (ty2 - ty1 + 1.0)
    union = ap + ag - overlap + eps

    # smallest enclosing box
    ew = jnp.maximum(jnp.maximum(px2, tx2) - jnp.minimum(px1, tx1) + 1.0, 0.0)
    eh = jnp.maximum(jnp.maximum(py2, ty2) - jnp.minimum(py1, ty1) + 1.0, 0.0)
    enclose = ew * eh + eps

    # loss = 1 - gious = 2 - overlap/union - union/enclose
    # computed with a single reciprocal (one divide per vreg instead of two)
    r = 1.0 / (union * enclose)
    loss = 2.0 - (overlap * enclose + union * union) * r

    # mask padded boxes (global box index >= n_valid) so partial sums are exact
    tile_r, lanes = loss.shape
    row_idx = jax.lax.broadcasted_iota(jnp.int32, (tile_r, lanes), 0)
    lane_idx = jax.lax.broadcasted_iota(jnp.int32, (tile_r, lanes), 1)
    gidx = pl.program_id(0) * tile_boxes + row_idx * lanes + lane_idx
    loss = jnp.where(gidx < n_valid, loss, 0.0)

    loss_ref[...] = loss
    # per-tile partial sums, reduced to one lane-dense (8, 128) vreg
    # (pure VALU adds of native (8,128) chunks; no cross-lane XLU reduce)
    psum_ref[0] = jnp.sum(loss.reshape(tile_r // 8, 8, lanes), axis=0)


@functools.partial(jax.jit, static_argnames=("eps",))
def giou_loss_pallas(pred, target, eps=1e-6):
    """Per-box GIoU loss + its (exact) sum via one Pallas kernel.

    Args:
      pred:   (N, 4) boxes (x1, y1, x2, y2)
      target: (N, 4) boxes
    Returns:
      (loss_per_box (N,) f32, loss_sum scalar f32)
    """
    n = pred.shape[0]

    rows_needed = -(-n // _LANES)                       # ceil(N / 128)
    rows_needed = max(8, ((rows_needed + 7) // 8) * 8)  # multiple of 8 sublanes
    tile_r = min(_MAX_TILE_ROWS, rows_needed)
    num_tiles = -(-rows_needed // tile_r)
    rows_total = num_tiles * tile_r
    n_pad = rows_total * _LANES

    def to_tiles(x):
        x = x.astype(jnp.float32)
        x = jnp.transpose(x)                            # (4, N)
        x = jnp.pad(x, ((0, 0), (0, n_pad - n)))        # (4, n_pad)
        return x.reshape(4, rows_total, _LANES)         # (4, R, 128)

    pred_t = to_tiles(pred)
    target_t = to_tiles(target)

    kernel = functools.partial(
        _giou_kernel, eps=eps, n_valid=n, tile_boxes=tile_r * _LANES)

    loss_tiles, psums = pl.pallas_call(
        kernel,
        out_shape=(
            jax.ShapeDtypeStruct((rows_total, _LANES), jnp.float32),
            jax.ShapeDtypeStruct((num_tiles, 8, _LANES), jnp.float32),
        ),
        grid=(num_tiles,),
        in_specs=[
            pl.BlockSpec((4, tile_r, _LANES), lambda i: (0, i, 0)),
            pl.BlockSpec((4, tile_r, _LANES), lambda i: (0, i, 0)),
        ],
        out_specs=(
            pl.BlockSpec((tile_r, _LANES), lambda i: (i, 0)),
            pl.BlockSpec((1, 8, _LANES), lambda i: (i, 0, 0)),
        ),
        compiler_params=pltpu.CompilerParams(
            dimension_semantics=("parallel",),   # shard grid across v7x's 2 TCs
        ),
    )(pred_t, target_t)

    loss_per_box = loss_tiles.reshape(n_pad)[:n]
    loss_sum = jnp.sum(psums)
    return loss_per_box, loss_sum


class GIoULoss:
    """JAX/Pallas equivalent of the PyTorch GIoULoss module forward."""

    def __init__(self, eps=1e-6, reduction="mean", loss_weight=1.0):
        self.eps = eps
        self.reduction = reduction
        self.loss_weight = loss_weight

    def __call__(self, pred, target, weight=None, avg_factor=None,
                 reduction_override=None):
        if weight is not None and not bool(jnp.any(weight > 0)):
            # NOTE: mirrors the eager PyTorch early-exit; requires a concrete
            # (non-traced) `weight`.
            return (pred * weight).sum()
        assert reduction_override in (None, "none", "mean", "sum")
        reduction = reduction_override if reduction_override else self.reduction

        loss_per_box, loss_sum = giou_loss_pallas(pred, target, eps=self.eps)

        if weight is not None:
            loss_per_box = loss_per_box * weight
            loss_sum = jnp.sum(loss_per_box)

        if reduction == "none":
            loss = loss_per_box
        elif reduction == "sum":
            loss = loss_sum
        else:  # 'mean' (mmdet weighted_loss: sum / N, or sum / avg_factor)
            if avg_factor is None:
                loss = loss_sum / loss_per_box.shape[0]
            else:
                loss = loss_sum / avg_factor
        return self.loss_weight * loss


def _ref_giou_loss(pred, target, eps=1e-6):
    """Pure-JAX reference (mirrors the PyTorch giou_loss)."""
    lt = jnp.maximum(pred[:, :2], target[:, :2])
    rb = jnp.minimum(pred[:, 2:], target[:, 2:])
    wh = jnp.maximum(rb - lt + 1.0, 0.0)
    overlap = wh[:, 0] * wh[:, 1]
    ap = (pred[:, 2] - pred[:, 0] + 1.0) * (pred[:, 3] - pred[:, 1] + 1.0)
    ag = (target[:, 2] - target[:, 0] + 1.0) * (target[:, 3] - target[:, 1] + 1.0)
    union = ap + ag - overlap + eps
    ious = overlap / union
    e_lt = jnp.minimum(pred[:, :2], target[:, :2])
    e_rb = jnp.maximum(pred[:, 2:], target[:, 2:])
    e_wh = jnp.maximum(e_rb - e_lt + 1.0, 0.0)
    e_area = e_wh[:, 0] * e_wh[:, 1] + eps
    gious = ious - (e_area - union) / e_area
    return 1.0 - gious


if __name__ == "__main__":
    key = jax.random.PRNGKey(0)
    k1, k2, k3, k4 = jax.random.split(key, 4)

    n = 64  # number of boxes
    # Well-formed boxes: (x1, y1) uniform, (x2, y2) = (x1, y1) + positive wh
    p_xy = jax.random.uniform(k1, (n, 2), jnp.float32, 0.0, 32.0)
    p_wh = jax.random.uniform(k2, (n, 2), jnp.float32, 1.0, 16.0)
    t_xy = jax.random.uniform(k3, (n, 2), jnp.float32, 0.0, 32.0)
    t_wh = jax.random.uniform(k4, (n, 2), jnp.float32, 1.0, 16.0)
    pred = jnp.concatenate([p_xy, p_xy + p_wh], axis=1)    # (n, 4)
    target = jnp.concatenate([t_xy, t_xy + t_wh], axis=1)  # (n, 4)

    module = GIoULoss(eps=1e-6, reduction="mean", loss_weight=1.0)
    loss = module(pred, target)
    loss = jax.block_until_ready(loss)

    # correctness checks vs. pure-JAX reference
    ref_per_box = _ref_giou_loss(pred, target, eps=1e-6)
    ref_mean = jnp.mean(ref_per_box)
    assert jnp.allclose(loss, ref_mean, rtol=1e-5, atol=1e-5), (loss, ref_mean)

    loss_none = module(pred, target, reduction_override="none")
    loss_none = jax.block_until_ready(loss_none)
    assert loss_none.shape == (n,)
    assert jnp.allclose(loss_none, ref_per_box, rtol=1e-5, atol=1e-5)

    print("KERNEL_OK")
</pallas_src>

<mosaic_0001>
module attributes {stable_mosaic.version = 11 : i64} {
  func.func @_giou_kernel(%arg0: i32, %arg1: memref<4x8x128xf32, #tpu.memory_space<vmem>>, %arg2: memref<4x8x128xf32, #tpu.memory_space<vmem>>, %arg3: memref<8x128xf32, #tpu.memory_space<vmem>>, %arg4: memref<1x8x128xf32, #tpu.memory_space<vmem>>) attributes {dimension_semantics = [#tpu.dimension_semantics<parallel>], iteration_bounds = array<i64: 1>, scalar_prefetch = 0 : i64, scratch_operands = 0 : i64, tpu.core_type = #tpu.core_type<tc>, window_params = [{transform_indices = @transform_0, window_bounds = array<i64: 4, 8, 128>}, {transform_indices = @transform_1, window_bounds = array<i64: 4, 8, 128>}, {transform_indices = @transform_2, window_bounds = array<i64: 8, 128>}, {transform_indices = @transform_3, window_bounds = array<i64: 1, 8, 128>}]} {
    %c0 = arith.constant 0 : index
    %c0_0 = arith.constant 0 : index
    %c0_1 = arith.constant 0 : index
    %0 = vector.load %arg1[%c0, %c0_0, %c0_1] : memref<4x8x128xf32, #tpu.memory_space<vmem>>, vector<1x8x128xf32>
    %1 = vector.shape_cast %0 : vector<1x8x128xf32> to vector<8x128xf32>
    %c1 = arith.constant 1 : index
    %c0_2 = arith.constant 0 : index
    %c0_3 = arith.constant 0 : index
    %2 = vector.load %arg1[%c1, %c0_2, %c0_3] : memref<4x8x128xf32, #tpu.memory_space<vmem>>, vector<1x8x128xf32>
    %3 = vector.shape_cast %2 : vector<1x8x128xf32> to vector<8x128xf32>
    %c2 = arith.constant 2 : index
    %c0_4 = arith.constant 0 : index
    %c0_5 = arith.constant 0 : index
    %4 = vector.load %arg1[%c2, %c0_4, %c0_5] : memref<4x8x128xf32, #tpu.memory_space<vmem>>, vector<1x8x128xf32>
    %5 = vector.shape_cast %4 : vector<1x8x128xf32> to vector<8x128xf32>
    %c3 = arith.constant 3 : index
    %c0_6 = arith.constant 0 : index
    %c0_7 = arith.constant 0 : index
    %6 = vector.load %arg1[%c3, %c0_6, %c0_7] : memref<4x8x128xf32, #tpu.memory_space<vmem>>, vector<1x8x128xf32>
    %7 = vector.shape_cast %6 : vector<1x8x128xf32> to vector<8x128xf32>
    %c0_8 = arith.constant 0 : index
    %c0_9 = arith.constant 0 : index
    %c0_10 = arith.constant 0 : index
    %8 = vector.load %arg2[%c0_8, %c0_9, %c0_10] : memref<4x8x128xf32, #tpu.memory_space<vmem>>, vector<1x8x128xf32>
    %9 = vector.shape_cast %8 : vector<1x8x128xf32> to vector<8x128xf32>
    %c1_11 = arith.constant 1 : index
    %c0_12 = arith.constant 0 : index
    %c0_13 = arith.constant 0 : index
    %10 = vector.load %arg2[%c1_11, %c0_12, %c0_13] : memref<4x8x128xf32, #tpu.memory_space<vmem>>, vector<1x8x128xf32>
    %11 = vector.shape_cast %10 : vector<1x8x128xf32> to vector<8x128xf32>
    %c2_14 = arith.constant 2 : index
    %c0_15 = arith.constant 0 : index
    %c0_16 = arith.constant 0 : index
    %12 = vector.load %arg2[%c2_14, %c0_15, %c0_16] : memref<4x8x128xf32, #tpu.memory_space<vmem>>, vector<1x8x128xf32>
    %13 = vector.shape_cast %12 : vector<1x8x128xf32> to vector<8x128xf32>
    %c3_17 = arith.constant 3 : index
    %c0_18 = arith.constant 0 : index
    %c0_19 = arith.constant 0 : index
    %14 = vector.load %arg2[%c3_17, %c0_18, %c0_19] : memref<4x8x128xf32, #tpu.memory_space<vmem>>, vector<1x8x128xf32>
    %15 = vector.shape_cast %14 : vector<1x8x128xf32> to vector<8x128xf32>
    %16 = arith.minimumf %5, %13 : vector<8x128xf32>
    %17 = arith.maximumf %1, %9 : vector<8x128xf32>
    %18 = arith.subf %16, %17 : vector<8x128xf32>
    %cst = arith.constant 1.000000e+00 : f32
    %19 = vector.broadcast %cst : f32 to vector<8x128xf32>
    %20 = arith.addf %18, %19 : vector<8x128xf32>
    %cst_20 = arith.constant 0.000000e+00 : f32
    %21 = vector.broadcast %cst_20 : f32 to vector<8x128xf32>
    %22 = arith.maximumf %20, %21 : vector<8x128xf32>
    %23 = arith.minimumf %7, %15 : vector<8x128xf32>
    %24 = arith.maximumf %3, %11 : vector<8x128xf32>
    %25 = arith.subf %23, %24 : vector<8x128xf32>
    %cst_21 = arith.constant 1.000000e+00 : f32
    %26 = vector.broadcast %cst_21 : f32 to vector<8x128xf32>
    %27 = arith.addf %25, %26 : vector<8x128xf32>
    %cst_22 = arith.constant 0.000000e+00 : f32
    %28 = vector.broadcast %cst_22 : f32 to vector<8x128xf32>
    %29 = arith.maximumf %27, %28 : vector<8x128xf32>
    %30 = arith.mulf %22, %29 : vector<8x128xf32>
    %31 = arith.subf %5, %1 : vector<8x128xf32>
    %cst_23 = arith.constant 1.000000e+00 : f32
    %32 = vector.broadcast %cst_23 : f32 to vector<8x128xf32>
    %33 = arith.addf %31, %32 : vector<8x128xf32>
    %34 = arith.subf %7, %3 : vector<8x128xf32>
    %cst_24 = arith.constant 1.000000e+00 : f32
    %35 = vector.broadcast %cst_24 : f32 to vector<8x128xf32>
    %36 = arith.addf %34, %35 : vector<8x128xf32>
    %37 = arith.mulf %33, %36 : vector<8x128xf32>
    %38 = arith.subf %13, %9 : vector<8x128xf32>
    %cst_25 = arith.constant 1.000000e+00 : f32
    %39 = vector.broadcast %cst_25 : f32 to vector<8x128xf32>
    %40 = arith.addf %38, %39 : vector<8x128xf32>
    %41 = arith.subf %15, %11 : vector<8x128xf32>
    %cst_26 = arith.constant 1.000000e+00 : f32
    %42 = vector.broadcast %cst_26 : f32 to vector<8x128xf32>
    %43 = arith.addf %41, %42 : vector<8x128xf32>
    %44 = arith.mulf %40, %43 : vector<8x128xf32>
    %45 = arith.addf %37, %44 : vector<8x128xf32>
    %46 = arith.subf %45, %30 : vector<8x128xf32>
    %cst_27 = arith.constant 9.99999997E-7 : f32
    %47 = vector.broadcast %cst_27 : f32 to vector<8x128xf32>
    %48 = arith.addf %46, %47 : vector<8x128xf32>
    %49 = arith.maximumf %5, %13 : vector<8x128xf32>
    %50 = arith.minimumf %1, %9 : vector<8x128xf32>
    %51 = arith.subf %49, %50 : vector<8x128xf32>
    %cst_28 = arith.constant 1.000000e+00 : f32
    %52 = vector.broadcast %cst_28 : f32 to vector<8x128xf32>
    %53 = arith.addf %51, %52 : vector<8x128xf32>
    %cst_29 = arith.constant 0.000000e+00 : f32
    %54 = vector.broadcast %cst_29 : f32 to vector<8x128xf32>
    %55 = arith.maximumf %53, %54 : vector<8x128xf32>
    %56 = arith.maximumf %7, %15 : vector<8x128xf32>
    %57 = arith.minimumf %3, %11 : vector<8x128xf32>
    %58 = arith.subf %56, %57 : vector<8x128xf32>
    %cst_30 = arith.constant 1.000000e+00 : f32
    %59 = vector.broadcast %cst_30 : f32 to vector<8x128xf32>
    %60 = arith.addf %58, %59 : vector<8x128xf32>
    %cst_31 = arith.constant 0.000000e+00 : f32
    %61 = vector.broadcast %cst_31 : f32 to vector<8x128xf32>
    %62 = arith.maximumf %60, %61 : vector<8x128xf32>
    %63 = arith.mulf %55, %62 : vector<8x128xf32>
    %cst_32 = arith.constant 9.99999997E-7 : f32
    %64 = vector.broadcast %cst_32 : f32 to vector<8x128xf32>
    %65 = arith.addf %63, %64 : vector<8x128xf32>
    %66 = arith.mulf %48, %65 : vector<8x128xf32>
    %cst_33 = arith.constant 1.000000e+00 : f32
    %67 = vector.broadcast %cst_33 : f32 to vector<8x128xf32>
    %68 = arith.divf %67, %66 : vector<8x128xf32>
    %69 = arith.mulf %30, %65 : vector<8x128xf32>
    %70 = arith.mulf %48, %48 : vector<8x128xf32>
    %71 = arith.addf %69, %70 : vector<8x128xf32>
    %72 = arith.mulf %71, %68 : vector<8x128xf32>
    %cst_34 = arith.constant 2.000000e+00 : f32
    %73 = vector.broadcast %cst_34 : f32 to vector<8x128xf32>
    %74 = arith.subf %73, %72 : vector<8x128xf32>
    %75 = tpu.iota {dimensions = array<i32: 0>} : vector<8x128xi32>
    %76 = tpu.iota {dimensions = array<i32: 1>} : vector<8x128xi32>
    %c1024_i32 = arith.constant 1024 : i32
    %77 = arith.muli %arg0, %c1024_i32 : i32
    %c128_i32 = arith.constant 128 : i32
    %78 = vector.broadcast %c128_i32 : i32 to vector<8x128xi32>
    %79 = arith.muli %75, %78 : vector<8x128xi32>
    %80 = vector.broadcast %77 : i32 to vector<8x128xi32>
    %81 = arith.addi %80, %79 : vector<8x128xi32>
    %82 = arith.addi %81, %76 : vector<8x128xi32>
    %c64_i32 = arith.constant 64 : i32
    %83 = vector.broadcast %c64_i32 : i32 to vector<8x128xi32>
    %84 = arith.cmpi slt, %82, %83 : vector<8x128xi32>
    %cst_35 = arith.constant 0.000000e+00 : f32
    %85 = vector.broadcast %cst_35 : f32 to vector<8x128xf32>
    %86 = arith.select %84, %74, %85 : vector<8x128xi1>, vector<8x128xf32>
    %c0_36 = arith.constant 0 : index
    %c0_37 = arith.constant 0 : index
    %87 = vector.load %arg3[%c0_36, %c0_37] : memref<8x128xf32, #tpu.memory_space<vmem>>, vector<8x128xf32>
    tpu.vector_store %arg3[%c0_36, %c0_37], %86 {strides = array<i32>} : memref<8x128xf32, #tpu.memory_space<vmem>>, vector<8x128xf32>,
    %88 = vector.shape_cast %86 : vector<8x128xf32> to vector<1x8x128xf32>
    %cst_38 = arith.constant dense<0.000000e+00> : vector<8x128xf32>
    %89 = vector.multi_reduction <add>, %88, %cst_38 [0] : vector<1x8x128xf32> to vector<8x128xf32>
    %c0_39 = arith.constant 0 : index
    %c0_40 = arith.constant 0 : index
    %c0_41 = arith.constant 0 : index
    %90 = vector.load %arg4[%c0_39, %c0_40, %c0_41] : memref<1x8x128xf32, #tpu.memory_space<vmem>>, vector<1x8x128xf32>
    %91 = vector.shape_cast %90 : vector<1x8x128xf32> to vector<8x128xf32>
    %92 = vector.shape_cast %89 : vector<8x128xf32> to vector<1x8x128xf32>
    tpu.vector_store %arg4[%c0_39, %c0_40, %c0_41], %92 {strides = array<i32>} : memref<1x8x128xf32, #tpu.memory_space<vmem>>, vector<1x8x128xf32>,
    return
  }
  func.func @transform_0(%arg0: i32) -> (i32, i32, i32) {
    %c0_i32 = arith.constant 0 : i32
    %c0_i32_0 = arith.constant 0 : i32
    %c0_i32_1 = arith.constant 0 : i32
    return %c0_i32, %arg0, %c0_i32_0 : i32, i32, i32
  }
  func.func @transform_1(%arg0: i32) -> (i32, i32, i32) {
    %c0_i32 = arith.constant 0 : i32
    %c0_i32_0 = arith.constant 0 : i32
    %c0_i32_1 = arith.constant 0 : i32
    return %c0_i32, %arg0, %c0_i32_0 : i32, i32, i32
  }
  func.func @transform_2(%arg0: i32) -> (i32, i32) {
    %c0_i32 = arith.constant 0 : i32
    %c0_i32_0 = arith.constant 0 : i32
    return %arg0, %c0_i32 : i32, i32
  }
  func.func @transform_3(%arg0: i32) -> (i32, i32, i32) {
    %c0_i32 = arith.constant 0 : i32
    %c0_i32_0 = arith.constant 0 : i32
    %c0_i32_1 = arith.constant 0 : i32
    return %arg0, %c0_i32, %c0_i32_0 : i32, i32, i32
  }
}

</mosaic_0001>

<bundles_post_ra>
// kernel: giou_loss_pallas.1
= control target key start
LH: loop header
LB: loop body
LE: loop exit
PB: predicated region body
PF: predicated region fallthrough
CT: control target
= control target key end

     0   :  { %v84_v45 = vlaneseq  ;;  %s164_s0 = inlined_call_operand.vmem [shape: f32[4,8,128], index: 0, kind: input, shape index: {}]   ;;  %s165_s1 = inlined_call_operand.vmem [shape: f32[4,8,128], index: 1, kind: input, shape index: {}]   ;;  %s166_s2 = inlined_call_operand.vmem [shape: f32[8,128], index: 2, kind: output, shape index: {0}]   ;;  %s167_s3 = inlined_call_operand.vmem [shape: f32[1,8,128], index: 3, kind: output, shape index: {1}]  }
   0x1   :  { %v13_v0 = vld [vmem:[%s164_s0] sm:$0xff]  ;;  %v106_v1 = vld [vmem:[%s164_s0 + $0x8] sm:$0xff]  ;;  %v107_v2 = vld [vmem:[%s164_s0 + $0x10] sm:$0xff] }
   0x2   :  { %v108_v3 = vld [vmem:[%s164_s0 + $0x18] sm:$0xff]  ;;  %v20_v4 = vld [vmem:[%s165_s1] sm:$0xff]  ;;  %v109_v5 = vld [vmem:[%s165_s1 + $0x8] sm:$0xff]  ;;  %v38_v6 = vsub.f32 %v107_v2, %v13_v0  ;;  %v85_v47 = vshrl.u32 %v84_v45, 7  ;;  %v87_v54 = vand.u32 127, %v84_v45 }
   0x3   :  { %v110_v7 = vld [vmem:[%s165_s1 + $0x10] sm:$0xff]  ;;  %v111_v8 = vld [vmem:[%s165_s1 + $0x18] sm:$0xff]  ;;  %v28_v9 = vmax.f32 %v13_v0, %v20_v4  ;;  %v33_v10 = vmax.f32 %v106_v1, %v109_v5  ;;  %v40_v11 = vsub.f32 %v108_v3, %v106_v1  ;;  %v52_v12 = vmin.f32 %v13_v0, %v20_v4 }
   0x4   :  { %v27_v13 = vmin.f32 %v107_v2, %v110_v7  ;;  %v32_v14 = vmin.f32 %v108_v3, %v111_v8  ;;  %v39_v15 = vadd.f32 1.0, %v38_v6  ;;  %v43_v16 = vsub.f32 %v110_v7, %v20_v4 }
   0x5   :  { %v41_v17 = vadd.f32 1.0, %v40_v11  ;;  %v45_v18 = vsub.f32 %v111_v8, %v109_v5  ;;  %v51_v19 = vmax.f32 %v107_v2, %v110_v7  ;;  %v56_v20 = vmax.f32 %v108_v3, %v111_v8 }
   0x6   :  { %v29_v21 = vsub.f32 %v27_v13, %v28_v9  ;;  %v34_v22 = vsub.f32 %v32_v14, %v33_v10  ;;  %v44_v23 = vadd.f32 1.0, %v43_v16  ;;  %v57_v24 = vmin.f32 %v106_v1, %v109_v5 }
   0x7   :  { %v42_v25 = vmul.f32 %v41_v17, %v39_v15  ;;  %v46_v26 = vadd.f32 1.0, %v45_v18  ;;  %v53_v27 = vsub.f32 %v51_v19, %v52_v12  ;;  %v89_v55 = vmul.u32 128, %v85_v47 }
   0x8   :  { %v30_v28 = vadd.f32 1.0, %v29_v21  ;;  %v35_v29 = vadd.f32 1.0, %v34_v22  ;;  %v58_v30 = vsub.f32 %v56_v20, %v57_v24 }
   0x9   :  { %v47_v31 = vmul.f32 %v46_v26, %v44_v23  ;;  %v54_v32 = vadd.f32 1.0, %v53_v27  ;;  %v92_v60 = vadd.s32 %v89_v55, %v87_v54 }
   0xa   :  { %v31_v33 = vmax.f32 %v30_v28, 0.0  ;;  %v36_v34 = vmax.f32 %v35_v29, 0.0  ;;  %v59_v35 = vadd.f32 1.0, %v58_v30 }
   0xb   :  { %v48_v36 = vadd.f32 %v47_v31, %v42_v25  ;;  %v55_v37 = vmax.f32 %v54_v32, 0.0  ;;  %vm93_vm4 = vcmp.lt.s32.totalorder %v92_v60, 64 }
   0xc   :  { %v37_v38 = vmul.f32 %v36_v34, %v31_v33  ;;  %v60_v39 = vmax.f32 %v59_v35, 0.0 }
   0xe   :  { %v49_v40 = vsub.f32 %v48_v36, %v37_v38  ;;  %v61_v41 = vmul.f32 %v60_v39, %v55_v37 }
  0x10   :  { %v50_v42 = vadd.f32 1e-06, %v49_v40  ;;  %v62_v43 = vadd.f32 1e-06, %v61_v41 }
  0x12   :  { %v63_v44 = vmul.f32 %v62_v43, %v50_v42  ;;  %v79_v50 = vmul.f32 %v62_v43, %v37_v38  ;;  %v80_v51 = vmul.f32 %v50_v42, %v50_v42 }
  0x14   :  { %112 = vrcp.f32 %v63_v44  ;;  %v75_v49 = vand.u32 2147483648, %v63_v44  ;;  %vm69_vm0 = vweird.f32 %v63_v44  ;;  %v73_v53 = vand.u32 2147483647, %v63_v44 }
  0x15   :  { %v81_v59 = vadd.f32 %v80_v51, %v79_v50 }
  0x16   :  { %v76_v57 = vor.u32 1.1754944e-38, %v75_v49  ;;  %vm74_vm3 = vcmp.eq.f32.partialorder %v73_v53, 8.507059e+37 }
  0x1a   :  { %v113_v46 = vpop.eup %112 }
  0x1b   :  { %v65_v48 = vmul.f32 %v113_v46, %v63_v44  ;;  %vm70_vm1 = vweird.f32 %v113_v46 }
  0x1c   :  { %vm71_vm2 = vmor %vm69_vm0, %vm70_vm1 }
  0x1d   :  { %v66_v52 = vsub.f32 1.0, %v65_v48 }
  0x1f   :  { %v67_v56 = vmul.f32 %v113_v46, %v66_v52 }
  0x21   :  { %v68_v58 = vadd.f32 %v113_v46, %v67_v56 }
  0x23   :  { %v72_v61 = vsel %vm71_vm2, %v113_v46, %v68_v58 }
  0x24   :  { %v77_v62 = vsel %vm74_vm3, %v76_v57, %v72_v61 }
  0x25   :  { %v82_v63 = vmul.f32 %v81_v59, %v77_v62 }
  0x27   :  { %v83_v0 = vsub.f32 2.0, %v82_v63 }
  0x29   :  { %v94_v1 = vsel %vm93_vm4, %v83_v0, 0.0 }
  0x2a   :  { %95 = vst [vmem:[%s166_s2] sm:$0xff] %v94_v1 }
  0x2b   :  { %97 = vst [vmem:[%s167_s3] sm:$0xff] %v94_v1 }

</bundles_post_ra>
